<compile_context>
chip_gen: v7x
topology: tpu7x:2x2x1
jax: 0.10.0
libtpu: 0.0.40
codegen_flags: <defaults>
</compile_context>

<pallas_src>
import jax
import jax.numpy as jnp
import numpy as np
from jax.experimental import pallas as pl
from jax.experimental.pallas import tpu as pltpu

_EPS = 2.3e-08  # matches the reference module's additive constant


def _round_up(v, m):
    return ((v + m - 1) // m) * m


def _make_adain_kernel(hw, hw_pad):
    inv_hw = np.float32(1.0 / hw)
    needs_mask = hw_pad != hw

    def kernel(x_ref, y_ref, o_ref):
        # x_ref / y_ref / o_ref: (rb, hw_pad) tiles in VMEM.
        x = x_ref[...].astype(jnp.float32)
        y = y_ref[...].astype(jnp.float32)

        # Per-row mean over the *true* spatial extent. Padded columns are zero,
        # so they don't perturb the sums; divide (multiply) by the true hw.
        mu_x = jnp.sum(x, axis=-1, keepdims=True) * inv_hw
        mu_y = jnp.sum(y, axis=-1, keepdims=True) * inv_hw

        dx = x - mu_x
        dy = y - mu_y

        if needs_mask:
            col = jax.lax.broadcasted_iota(jnp.int32, (1, hw_pad), 1)
            valid = col < hw
            dx_c = jnp.where(valid, dx, 0.0)
            dy_c = jnp.where(valid, dy, 0.0)
        else:
            dx_c = dx
            dy_c = dy

        ssq_x = jnp.sum(dx_c * dx_c, axis=-1, keepdims=True)
        ssq_y = jnp.sum(dy_c * dy_c, axis=-1, keepdims=True)

        # sigma_y / sigma_x == sqrt((ssq_y + eps) / (ssq_x + eps)); the 1/hw
        # factors cancel. One per-row sqrt + divide (EUP slot), no per-element
        # division anywhere in the hot path.
        scale = jnp.sqrt((ssq_y + _EPS) / (ssq_x + _EPS))

        o_ref[...] = (scale * dx + mu_y).astype(o_ref.dtype)

    return kernel


def adain(x, y, *, row_block=None, vmem_limit_bytes=None):
    """AdaIN(x, y) with x, y in NCHW layout. Returns NCHW."""
    assert x.shape == y.shape, "x and y must have the same shape"
    N, C, H, W = x.shape
    NC, HW = N * C, H * W

    itemsize = jnp.dtype(x.dtype).itemsize
    HW_pad = _round_up(HW, 128)  # lane-dense last dim

    # --- choose the row block -----------------------------------------------
    # Pure HBM-bandwidth-bound kernel (3 streams, no reuse): pick the largest
    # tile that keeps 3 streams x 2 pipeline buffers (+ f32 temps) comfortably
    # inside VMEM on every generation (including v7x's 64 MiB).
    if row_block is None:
        target_tile_bytes = 2 << 20  # ~2 MiB per input tile per buffer
        rb = max(8, (target_tile_bytes // (HW_pad * itemsize)) // 8 * 8)
        nc8 = _round_up(NC, 8)
        if rb >= nc8:
            # Whole problem fits within the budget: split into (at least) two
            # grid steps when possible so both v7x TensorCores get work.
            rb = nc8 if nc8 < 16 else _round_up(-(-nc8 // 2), 8)
    else:
        rb = max(8, _round_up(row_block, 8))

    NC_pad = _round_up(NC, rb)
    grid = (NC_pad // rb,)

    if vmem_limit_bytes is None:
        tile_bytes = rb * HW_pad * itemsize
        f32_tile_bytes = rb * HW_pad * 4
        need = 6 * tile_bytes + 6 * f32_tile_bytes  # 3 streams x 2 bufs + temps
        vmem_limit_bytes = int(min(64 << 20, max(32 << 20, need)))

    # --- pad to (NC_pad, HW_pad) so every block is full and lane-dense -------
    x2 = x.reshape(NC, HW)
    y2 = y.reshape(NC, HW)
    pad_r, pad_c = NC_pad - NC, HW_pad - HW
    if pad_r or pad_c:
        x2 = jnp.pad(x2, ((0, pad_r), (0, pad_c)))
        y2 = jnp.pad(y2, ((0, pad_r), (0, pad_c)))

    kernel = _make_adain_kernel(HW, HW_pad)

    cost = pl.CostEstimate(
        flops=10 * NC * HW,
        transcendentals=2 * NC,
        bytes_accessed=3 * NC * HW * itemsize,
    )

    out2 = pl.pallas_call(
        kernel,
        out_shape=jax.ShapeDtypeStruct((NC_pad, HW_pad), x.dtype),
        grid_spec=pltpu.PrefetchScalarGridSpec(
            num_scalar_prefetch=0,
            grid=grid,
            in_specs=[
                pl.BlockSpec((rb, HW_pad), lambda i: (i, 0)),
                pl.BlockSpec((rb, HW_pad), lambda i: (i, 0)),
            ],
            out_specs=pl.BlockSpec((rb, HW_pad), lambda i: (i, 0)),
        ),
        compiler_params=pltpu.CompilerParams(
            dimension_semantics=("parallel",),
            vmem_limit_bytes=vmem_limit_bytes,
        ),
        cost_estimate=cost,
    )(x2, y2)

    if pad_r or pad_c:
        out2 = out2[:NC, :HW]
    return out2.reshape(N, C, H, W)


def _adain_reference(x, y):
    """Pure-JAX reference mirroring the PyTorch module semantics."""
    def mu(v):
        return jnp.sum(v, axis=(2, 3)) / (v.shape[2] * v.shape[3])

    def sigma(v):
        d = v - mu(v)[:, :, None, None]
        return jnp.sqrt(
            (jnp.sum(d ** 2, axis=(2, 3)) + _EPS) / (v.shape[2] * v.shape[3])
        )

    mx = mu(x)[:, :, None, None]
    my = mu(y)[:, :, None, None]
    sx = sigma(x)[:, :, None, None]
    sy = sigma(y)[:, :, None, None]
    return sy * ((x - mx) / sx) + my


if __name__ == "__main__":
    key = jax.random.PRNGKey(0)

    # --- primary test: aligned spatial size, shape from the module spec ------
    kx, ky = jax.random.split(key)
    N, C, H, W = 2, 4, 16, 16
    x = jax.random.normal(kx, (N, C, H, W), dtype=jnp.float32)
    y = jax.random.normal(ky, (N, C, H, W), dtype=jnp.float32) * 2.0 + 0.5

    out = jax.block_until_ready(adain(x, y))
    ref = _adain_reference(x, y)
    np.testing.assert_allclose(np.asarray(out), np.asarray(ref),
                               rtol=1e-5, atol=1e-5)

    # --- secondary test: non-128-aligned H*W and non-multiple-of-8 NC --------
    kx2, ky2 = jax.random.split(jax.random.PRNGKey(1))
    x2 = jax.random.normal(kx2, (2, 5, 14, 14), dtype=jnp.float32)
    y2 = jax.random.normal(ky2, (2, 5, 14, 14), dtype=jnp.float32) * 1.5 - 0.3

    out2 = jax.block_until_ready(adain(x2, y2))
    ref2 = _adain_reference(x2, y2)
    np.testing.assert_allclose(np.asarray(out2), np.asarray(ref2),
                               rtol=1e-5, atol=1e-5)

    print("KERNEL_OK")
</pallas_src>

<mosaic_0001>
module attributes {stable_mosaic.version = 11 : i64} {
  func.func @kernel(%arg0: i32, %arg1: memref<8x256xf32, #tpu.memory_space<vmem>>, %arg2: memref<8x256xf32, #tpu.memory_space<vmem>>, %arg3: memref<8x256xf32, #tpu.memory_space<vmem>>) attributes {dimension_semantics = [#tpu.dimension_semantics<parallel>], iteration_bounds = array<i64: 1>, scalar_prefetch = 0 : i64, scratch_operands = 0 : i64, tpu.core_type = #tpu.core_type<tc>, window_params = [{transform_indices = @transform_0, window_bounds = array<i64: 8, 256>}, {transform_indices = @transform_1, window_bounds = array<i64: 8, 256>}, {transform_indices = @transform_2, window_bounds = array<i64: 8, 256>}]} {
    %c0 = arith.constant 0 : index
    %c0_0 = arith.constant 0 : index
    %0 = vector.load %arg1[%c0, %c0_0] : memref<8x256xf32, #tpu.memory_space<vmem>>, vector<8x256xf32>
    %c0_1 = arith.constant 0 : index
    %c0_2 = arith.constant 0 : index
    %1 = vector.load %arg2[%c0_1, %c0_2] : memref<8x256xf32, #tpu.memory_space<vmem>>, vector<8x256xf32>
    %cst = arith.constant dense<0.000000e+00> : vector<8xf32>
    %2 = vector.multi_reduction <add>, %0, %cst [1] : vector<8x256xf32> to vector<8xf32>
    %3 = vector.shape_cast %2 : vector<8xf32> to vector<8x1xf32>
    %cst_3 = arith.constant 3.906250e-03 : f32
    %4 = vector.broadcast %cst_3 : f32 to vector<8x1xf32>
    %5 = arith.mulf %3, %4 : vector<8x1xf32>
    %cst_4 = arith.constant dense<0.000000e+00> : vector<8xf32>
    %6 = vector.multi_reduction <add>, %1, %cst_4 [1] : vector<8x256xf32> to vector<8xf32>
    %7 = vector.shape_cast %6 : vector<8xf32> to vector<8x1xf32>
    %cst_5 = arith.constant 3.906250e-03 : f32
    %8 = vector.broadcast %cst_5 : f32 to vector<8x1xf32>
    %9 = arith.mulf %7, %8 : vector<8x1xf32>
    %10 = vector.broadcast %5 : vector<8x1xf32> to vector<8x256xf32>
    %11 = arith.subf %0, %10 : vector<8x256xf32>
    %12 = vector.broadcast %9 : vector<8x1xf32> to vector<8x256xf32>
    %13 = arith.subf %1, %12 : vector<8x256xf32>
    %14 = arith.mulf %11, %11 : vector<8x256xf32>
    %cst_6 = arith.constant dense<0.000000e+00> : vector<8xf32>
    %15 = vector.multi_reduction <add>, %14, %cst_6 [1] : vector<8x256xf32> to vector<8xf32>
    %16 = vector.shape_cast %15 : vector<8xf32> to vector<8x1xf32>
    %17 = arith.mulf %13, %13 : vector<8x256xf32>
    %cst_7 = arith.constant dense<0.000000e+00> : vector<8xf32>
    %18 = vector.multi_reduction <add>, %17, %cst_7 [1] : vector<8x256xf32> to vector<8xf32>
    %19 = vector.shape_cast %18 : vector<8xf32> to vector<8x1xf32>
    %cst_8 = arith.constant 2.300000e-08 : f32
    %20 = vector.broadcast %cst_8 : f32 to vector<8x1xf32>
    %21 = arith.addf %19, %20 : vector<8x1xf32>
    %cst_9 = arith.constant 2.300000e-08 : f32
    %22 = vector.broadcast %cst_9 : f32 to vector<8x1xf32>
    %23 = arith.addf %16, %22 : vector<8x1xf32>
    %24 = arith.divf %21, %23 : vector<8x1xf32>
    %25 = math.sqrt %24 : vector<8x1xf32>
    %26 = vector.broadcast %25 : vector<8x1xf32> to vector<8x256xf32>
    %27 = arith.mulf %26, %11 : vector<8x256xf32>
    %28 = vector.broadcast %9 : vector<8x1xf32> to vector<8x256xf32>
    %29 = arith.addf %27, %28 : vector<8x256xf32>
    %c0_10 = arith.constant 0 : index
    %c0_11 = arith.constant 0 : index
    %30 = vector.load %arg3[%c0_10, %c0_11] : memref<8x256xf32, #tpu.memory_space<vmem>>, vector<8x256xf32>
    tpu.vector_store %arg3[%c0_10, %c0_11], %29 {strides = array<i32>} : memref<8x256xf32, #tpu.memory_space<vmem>>, vector<8x256xf32>,
    return
  }
  func.func @transform_0(%arg0: i32) -> (i32, i32) {
    %c0_i32 = arith.constant 0 : i32
    %c0_i32_0 = arith.constant 0 : i32
    return %arg0, %c0_i32 : i32, i32
  }
  func.func @transform_1(%arg0: i32) -> (i32, i32) {
    %c0_i32 = arith.constant 0 : i32
    %c0_i32_0 = arith.constant 0 : i32
    return %arg0, %c0_i32 : i32, i32
  }
  func.func @transform_2(%arg0: i32) -> (i32, i32) {
    %c0_i32 = arith.constant 0 : i32
    %c0_i32_0 = arith.constant 0 : i32
    return %arg0, %c0_i32 : i32, i32
  }
}

</mosaic_0001>

<bundles_post_ra>
// kernel: tpu_custom_call.1
= control target key start
LH: loop header
LB: loop body
LE: loop exit
PB: predicated region body
PF: predicated region fallthrough
CT: control target
= control target key end

     0   :  { %7 = vsyncpa [#allocation3], 0  ;;  %s228_s0 = inlined_call_operand.hbm [shape: f32[8,256], index: 0, kind: input, shape index: {}]   ;;  %s229_s1 = inlined_call_operand.hbm [shape: f32[8,256], index: 1, kind: input, shape index: {}]   ;;  %s230_s2 = inlined_call_operand.hbm [shape: f32[8,256], index: 2, kind: output, shape index: {}]  }
   0x1   :  { %8 = vsyncpa [#allocation6], 0 }
   0x2   :  { %9 = vsyncpa [#allocation4], 0  ;;  %s174_s9 = smov [#allocation2]   ;;  %s175_s11 = smov [#allocation5]  }
   0x3   :  { %s16_s10 = sshll.u32 %s174_s9, 4  ;;  %s26_s12 = sshll.u32 %s175_s11, 4  ;;  %s17_s10 = int_to_ptr.vmem [resolvable:$true] %s16_s10  ;;  %s27_s12 = int_to_ptr.vmem [resolvable:$true] %s26_s12 }
   0x4   :  { %s102_s15 = scalar_lea.hbm %s228_s0, 256 }
   0x5   :  { %p103_p0 = scmp.ne.s32.totalorder %s228_s0, %s102_s15  ;;  %p106_p1 = scmp.lt.u32.totalorder %s102_s15, %s228_s0 }
   0x7   :  { %p108_p2 = pnand %p106_p1, %p103_p0 }
   0x9   :  { %111 = shalt.err (!%p108_p2)
}
   0xa   :  { %s112_s20 = scalar_lea.vmem %s17_s10, 256  ;;  %p117_p4 = scmp.lt.s32.totalorder %s17_s10, %s17_s10 }
   0xb   :  { %p113_p3 = scmp.ne.s32.totalorder %s17_s10, %s112_s20  ;;  %p118_p5 = scmp.lt.s32.totalorder %s112_s20, %s112_s20 }
   0xd   :  { %p119_p6 = por %p118_p5, %p117_p4 }
   0xf   :  { %p120_p7 = pnand %p119_p6, %p113_p3 }
  0x11   :  { %123 = shalt.err (!%p120_p7)
}
  0x12   :  { %19 = dma.hbm_to_vmem [thread:$0]  %s228_s0, 256, %s17_s10, [#allocation3]  }
  0x13   :  { %s124_s25 = scalar_lea.hbm %s229_s1, 256 }
  0x14   :  { %p125_p8 = scmp.ne.s32.totalorder %s229_s1, %s124_s25  ;;  %p128_p9 = scmp.lt.u32.totalorder %s124_s25, %s229_s1 }
  0x16   :  { %p130_p10 = pnand %p128_p9, %p125_p8 }
  0x18   :  { %133 = shalt.err (!%p130_p10)
}
  0x19   :  { %s134_s30 = scalar_lea.vmem %s27_s12, 256  ;;  %p139_p12 = scmp.lt.s32.totalorder %s27_s12, %s27_s12 }
  0x1a   :  { %p135_p11 = scmp.ne.s32.totalorder %s27_s12, %s134_s30  ;;  %p140_p13 = scmp.lt.s32.totalorder %s134_s30, %s134_s30 }
  0x1c   :  { %p141_p0 = por %p140_p13, %p139_p12 }
  0x1e   :  { %p142_p1 = pnand %p141_p0, %p135_p11 }
  0x20   :  { %145 = shalt.err (!%p142_p1)
}
  0x21   :  { %29 = dma.hbm_to_vmem [thread:$0]  %s229_s1, 256, %s27_s12, [#allocation6]  }
  0x22   :  { %168 = dma.done.wait [#allocation3], 256  }
  0x23   :  { %169 = vsyncadd [#allocation3], 4294967040 }
  0x24   :  { %170 = dma.done.wait [#allocation6], 256  }
  0x25   :  { %171 = vsyncadd [#allocation6], 4294967040  ;;  %v36_v0 = vld [vmem:[#allocation2] sm:$0xff]  ;;  %v37_v1 = vld [vmem:[#allocation2 + $0x8] sm:$0xff]  ;;  %s176_s1 = smov [#allocation7]  }
  0x26   :  { %v38_v2 = vld [vmem:[#allocation5] sm:$0xff]  ;;  %v40_v3 = vadd.f32 %v37_v1, %v36_v0  ;;  %v39_v4 = vld [vmem:[#allocation5 + $0x8] sm:$0xff]  ;;  %s85_s4 = sshll.u32 %s176_s1, 4  ;;  %s86_s4 = int_to_ptr.vmem [resolvable:$true] %s85_s4 }
  0x27   :  { %v44_v5 = vadd.f32 %v39_v4, %v38_v2  ;;  %s146_s5 = scalar_lea.vmem %s86_s4, 256  ;;  %p151_p3 = scmp.lt.s32.totalorder %s86_s4, %s86_s4 }
  0x28   :  { %41 = vadd.xlane.f32.xlu0 %v40_v3  ;;  %p147_p2 = scmp.ne.s32.totalorder %s86_s4, %s146_s5  ;;  %p152_p4 = scmp.lt.s32.totalorder %s146_s5, %s146_s5 }
  0x2a   :  { %p153_p5 = por %p152_p4, %p151_p3 }
  0x2c   :  { %45 = vadd.xlane.f32.xlu0 %v44_v5  ;;  %p154_p6 = pnand %p153_p5, %p147_p2 }
  0xb5   :  { %v42_v6 = vpop.xlane.xlu0 %41 }
  0xb6   :  { %v43_v7 = vmul.f32 0.00390625, %v42_v6 }
  0xb8   :  { %v48_v8 = vsub.f32 %v36_v0, %v43_v7  ;;  %v49_v9 = vsub.f32 %v37_v1, %v43_v7 }
  0xb9   :  { %v46_v10 = vpop.xlane.xlu0 %45 }
  0xba   :  { %v52_v11 = vmul.f32 %v48_v8, %v48_v8  ;;  %v53_v12 = vmul.f32 %v49_v9, %v49_v9  ;;  %v47_v13 = vmul.f32 0.00390625, %v46_v10 }
  0xbc   :  { %v54_v14 = vadd.f32 %v53_v12, %v52_v11  ;;  %v50_v15 = vsub.f32 %v38_v2, %v47_v13  ;;  %v51_v16 = vsub.f32 %v39_v4, %v47_v13 }
  0xbe   :  { %55 = vadd.xlane.f32.xlu1 %v54_v14  ;;  %v57_v17 = vmul.f32 %v50_v15, %v50_v15  ;;  %v58_v18 = vmul.f32 %v51_v16, %v51_v16 }
  0xc0   :  { %v59_v19 = vadd.f32 %v58_v18, %v57_v17 }
  0xc2   :  { %60 = vadd.xlane.f32.xlu1 %v59_v19 }
 0x14b   :  { %v56_v20 = vpop.xlane.xlu1 %55 }
 0x14c   :  { %v63_v21 = vadd.f32 2.3e-08, %v56_v20 }
 0x14e   :  { %98 = vrcp.f32 %v63_v21 }
 0x14f   :  { %v61_v22 = vpop.xlane.xlu1 %60 }
 0x150   :  { %v62_v23 = vadd.f32 2.3e-08, %v61_v22 }
 0x158   :  { %v99_v24 = vpop.eup %98 }
 0x159   :  { %v65_v25 = vmul.f32 %v99_v24, %v62_v23 }
 0x15b   :  { %100 = vrsqrt.f32 %v65_v25  ;;  %vm68_vm0 = vcmp.eq.f32.partialorder %v65_v25, inf  ;;  %v71_v28 = vand.u32 2147483648, %v65_v25  ;;  %vm70_vm1 = vcmp.eq.f32.partialorder %v65_v25, 0.0 }
 0x165   :  { %v101_v26 = vpop.eup %100 }
 0x166   :  { %v67_v27 = vmul.f32 %v101_v26, %v65_v25 }
 0x168   :  { %v69_v29 = vsel %vm68_vm0, %v65_v25, %v67_v27 }
 0x169   :  { %v72_v30 = vsel %vm70_vm1, %v71_v28, %v69_v29 }
 0x16a   :  { %v73_v31 = vmul.f32 %v72_v30, %v48_v8  ;;  %v74_v32 = vmul.f32 %v72_v30, %v49_v9 }
 0x16c   :  { %v75_v33 = vadd.f32 %v73_v31, %v47_v13  ;;  %v76_v34 = vadd.f32 %v74_v32, %v47_v13 }
 0x16e   :  { %77 = vst [vmem:[#allocation7] sm:$0xff] %v75_v33  ;;  %78 = vst [vmem:[#allocation7 + $0x8] sm:$0xff] %v76_v34 }
 0x16f   :  { %157 = shalt.err (!%p154_p6)
}
 0x170   :  { %s158_s8 = scalar_lea.hbm %s230_s2, 256 }
 0x171   :  { %p159_p7 = scmp.ne.s32.totalorder %s230_s2, %s158_s8  ;;  %p162_p8 = scmp.lt.u32.totalorder %s158_s8, %s230_s2 }
 0x173   :  { %p164_p9 = pnand %p162_p8, %p159_p7 }
 0x175   :  { %167 = shalt.err (!%p164_p9)
}
 0x176   :  { %88 = dma.vmem_to_hbm [thread:$0]  %s86_s4, 256, %s230_s2, [#allocation4]  }
 0x177   :  { %172 = dma.done.wait [#allocation4], 256  }
 0x178   :  { %173 = vsyncadd [#allocation4], 4294967040 }
 0x179   :  { %92 = vsyncpa [#allocation3], 1 }
 0x17a   :  { %93 = vsyncpa [#allocation6], 1 }
 0x17b   :  { %94 = vsyncpa [#allocation4], 1 }

</bundles_post_ra>
